<compile_context>
chip_gen: v5e
topology: v5e:2x2
jax: 0.10.0
libtpu: 0.0.40
codegen_flags: <defaults>
</compile_context>

<pallas_src>
import numpy as np
import jax
import jax.numpy as jnp
from jax.experimental import pallas as pl
from jax.experimental.pallas import tpu as pltpu


def _cdiv(a: int, b: int) -> int:
    return -(-a // b)


def _round_up(a: int, b: int) -> int:
    return _cdiv(a, b) * b


def _default_num_cores() -> int:
    """TensorCores addressable from one JAX device (perf-only heuristic)."""
    try:
        kind = jax.devices()[0].device_kind.lower()
    except Exception:
        return 1
    # v4 / v5p megacore and v7x-style parts expose 2 TensorCores per device;
    # single-core v5e / v6e gain nothing from an extra core-split axis.
    if ("v4" in kind) or ("v5p" in kind) or ("v7" in kind) or ("7x" in kind):
        return 2
    return 1


def _segment_matrices(num_classes: int, pack: int, cls_id: int):
    """Constant 0/1 matrices driving the MXU segment ops.

    Bsel[j, l] = 1  iff  j == segment(l)*C + cls_id
        (x @ Bsel broadcasts each segment's cls logit to all its lanes)
    Dseg[j, l] = 1  iff  segment(j) == segment(l)
        (e @ Dseg = per-segment sums, broadcast back over the segment lanes)
    """
    w = pack * num_classes
    lane = np.arange(w)
    seg = lane // num_classes
    bsel = (lane[:, None] == (seg[None, :] * num_classes + cls_id)).astype(np.float32)
    dseg = (seg[:, None] == seg[None, :]).astype(np.float32)
    return jnp.asarray(bsel), jnp.asarray(dseg)


def _make_kernel(packed_rows: int, tile: int, steps: int):
    has_partial_tile = (packed_rows % tile) != 0

    def kernel(conf_ref, bsel_ref, dseg_ref, out_ref):
        i = pl.program_id(1)

        @pl.when(i == 0)
        def _init():
            out_ref[...] = jnp.zeros_like(out_ref)

        tile_idx = pl.program_id(0) * steps + i
        rows_left = packed_rows - tile_idx * tile   # <= 0 for clamped dup tiles

        @pl.when(rows_left > 0)
        def _compute():
            x = conf_ref[...].astype(jnp.float32)                 # (tile, W)
            if has_partial_tile:
                # Zero packed-rows past the end of the data (Pallas pads the
                # final partial block with unspecified values).  A zeroed row
                # can never contribute: its row-sum is 0 and it is never
                # selected with C*pack > 10 classes per segment.
                row_ids = jax.lax.broadcasted_iota(jnp.int32, x.shape, 0)
                x = jnp.where(row_ids < rows_left, x, 0.0)

            # softmax(x)[cls] > 0.1   <=>   sum_c exp(x_c - x_cls) < 10
            x_cls = jnp.dot(x, bsel_ref[...],
                            preferred_element_type=jnp.float32,
                            precision=jax.lax.Precision.HIGHEST)   # (tile, W)
            e = jnp.exp(x - x_cls)
            denom = jnp.dot(e, dseg_ref[...],
                            preferred_element_type=jnp.float32,
                            precision=jax.lax.Precision.HIGHEST)   # (tile, W)
            contrib = jnp.where(denom < 10.0, x, 0.0)
            out_ref[...] += jnp.sum(contrib)

    return kernel


def ssd_output_extractor(ssd_out, cls_id: int, *, tile_packed_rows: int = 4096,
                         num_cores=None):
    """JAX/Pallas equivalent of SSD_Output_Extractor(cls_id).forward(ssd_out)."""
    confidence, _locations = ssd_out           # locations unused, as in PyTorch
    B, N, C = confidence.shape
    rows = B * N

    # Largest pack factor whose (pack*C)-lane rows still fit one vreg and that
    # divides rows: the [rows/pack, pack*C] reshape is free (data contiguous),
    # so there is no wrapper padding / extra HBM pass.
    pack = 1
    for p in range(max(1, 128 // C), 1, -1):
        if rows % p == 0:
            pack = p
            break
    W = pack * C
    packed_rows = rows // pack
    conf_packed = confidence.reshape(packed_rows, W)

    nc = _default_num_cores() if num_cores is None else num_cores
    nc = max(1, int(nc))

    # Tile (packed rows per grid step): 32-aligned, aiming for >= ~4 steps per
    # core, capped so VMEM stays a few MiB even on v7x's 64 MiB parts.
    max_tile = max(32, _round_up(tile_packed_rows, 32))
    tile = min(max_tile, _round_up(_cdiv(packed_rows, 4 * nc), 32))
    if tile >= packed_rows:
        tile = packed_rows                     # single (possibly ragged) block
    total_tiles = _cdiv(packed_rows, tile)
    nc = max(1, min(nc, total_tiles))
    steps = _cdiv(total_tiles, nc)

    bsel, dseg = _segment_matrices(C, pack, cls_id)

    def conf_map(c, i):
        # With an odd tile count vs. core count, a few trailing (core, step)
        # pairs point past the data; clamp them onto the last real tile — the
        # kernel skips their compute entirely via pl.when(rows_left > 0).
        return (jnp.minimum(c * steps + i, total_tiles - 1), 0)

    out = pl.pallas_call(
        _make_kernel(packed_rows, tile, steps),
        out_shape=jax.ShapeDtypeStruct((nc, 8, 128), jnp.float32),
        grid_spec=pltpu.PrefetchScalarGridSpec(
            num_scalar_prefetch=0,
            grid=(nc, steps),
            in_specs=[
                pl.BlockSpec((tile, W), conf_map),
                pl.BlockSpec((W, W), lambda c, i: (0, 0)),   # Bsel (constant)
                pl.BlockSpec((W, W), lambda c, i: (0, 0)),   # Dseg (constant)
            ],
            out_specs=pl.BlockSpec((1, 8, 128), lambda c, i: (c, 0, 0)),
        ),
        compiler_params=pltpu.CompilerParams(
            dimension_semantics=("parallel", "arbitrary"),
            vmem_limit_bytes=40 * 1024 * 1024,
        ),
    )(conf_packed, bsel, dseg)

    # Each core accumulated its partial across its whole (8, 128) block.
    return jnp.sum(out[:, 0, 0])


def _reference(ssd_out, cls_id: int):
    confidence, _ = ssd_out
    probs = jax.nn.softmax(confidence.astype(jnp.float32), axis=2)
    mask = (probs[:, :, cls_id] > 0.1).astype(jnp.float32)
    return jnp.sum(confidence.astype(jnp.float32) * mask[..., None])


if __name__ == "__main__":
    key = jax.random.PRNGKey(0)

    # (B, N, C), cls_id, logit scale, wrapper kwargs.  Cases exercise: full
    # pack=6 lane-dense path, partial last tile, forced 2-core split with a
    # clamped duplicate tile, extreme logits (exp overflow -> not selected),
    # and the degenerate pack=1 / single ragged block path.
    cases = [
        ((2, 384, 21), 15, 3.0, {}),
        ((2, 900, 21), 3, 3.0, dict(tile_packed_rows=64)),
        ((2, 700, 21), 7, 3.0, dict(num_cores=2)),
        ((1, 64, 21), 11, 50.0, {}),
        ((1, 23, 21), 4, 3.0, {}),
    ]

    for (B, N, C), cls_id, scale, kwargs in cases:
        key, k_conf, k_loc = jax.random.split(key, 3)
        confidence = jax.random.normal(k_conf, (B, N, C), dtype=jnp.float32) * scale
        locations = jax.random.normal(k_loc, (B, N, 4), dtype=jnp.float32)

        out = ssd_output_extractor((confidence, locations), cls_id, **kwargs)
        out = jax.block_until_ready(out)
        ref = _reference((confidence, locations), cls_id)
        assert jnp.allclose(out, ref, rtol=1e-3, atol=2e-1), (
            (B, N, C), cls_id, float(out), float(ref))

    print("KERNEL_OK")
</pallas_src>

<mosaic_0001>
module attributes {stable_mosaic.version = 11 : i64} {
  func.func @kernel(%arg0: i32, %arg1: i32, %arg2: memref<32x126xf32, #tpu.memory_space<vmem>>, %arg3: memref<126x126xf32, #tpu.memory_space<vmem>>, %arg4: memref<126x126xf32, #tpu.memory_space<vmem>>, %arg5: memref<1x8x128xf32, #tpu.memory_space<vmem>>) attributes {dimension_semantics = [#tpu.dimension_semantics<parallel>, #tpu.dimension_semantics<arbitrary>], iteration_bounds = array<i64: 1, 4>, scalar_prefetch = 0 : i64, scratch_operands = 0 : i64, tpu.core_type = #tpu.core_type<tc>, window_params = [{transform_indices = @transform_0, window_bounds = array<i64: 32, 126>}, {pipeline_mode = #tpu.pipeline_mode<synchronous>, transform_indices = @transform_1, window_bounds = array<i64: 126, 126>}, {pipeline_mode = #tpu.pipeline_mode<synchronous>, transform_indices = @transform_2, window_bounds = array<i64: 126, 126>}, {transform_indices = @transform_3, window_bounds = array<i64: 1, 8, 128>}]} {
    %c0_i32 = arith.constant 0 : i32
    %0 = arith.cmpi eq, %arg1, %c0_i32 : i32
    %1 = arith.extui %0 : i1 to i32
    %c0_i32_0 = arith.constant 0 : i32
    %2 = arith.cmpi ne, %1, %c0_i32_0 : i32
    scf.if %2 {
      %cst = arith.constant 0.000000e+00 : f32
      %10 = vector.broadcast %cst : f32 to vector<1x8x128xf32>
      %c0 = arith.constant 0 : index
      %c0_3 = arith.constant 0 : index
      %c0_4 = arith.constant 0 : index
      %11 = vector.load %arg5[%c0, %c0_3, %c0_4] : memref<1x8x128xf32, #tpu.memory_space<vmem>>, vector<1x8x128xf32>
      tpu.vector_store %arg5[%c0, %c0_3, %c0_4], %10 {strides = array<i32>} : memref<1x8x128xf32, #tpu.memory_space<vmem>>, vector<1x8x128xf32>,
    } else {
    }
    %c4_i32 = arith.constant 4 : i32
    %3 = arith.muli %arg0, %c4_i32 : i32
    %4 = arith.addi %3, %arg1 : i32
    %c32_i32 = arith.constant 32 : i32
    %5 = arith.muli %4, %c32_i32 : i32
    %c128_i32 = arith.constant 128 : i32
    %6 = arith.subi %c128_i32, %5 : i32
    %c0_i32_1 = arith.constant 0 : i32
    %7 = arith.cmpi sgt, %6, %c0_i32_1 : i32
    %8 = arith.extui %7 : i1 to i32
    %c0_i32_2 = arith.constant 0 : i32
    %9 = arith.cmpi ne, %8, %c0_i32_2 : i32
    scf.if %9 {
      %c0 = arith.constant 0 : index
      %c0_3 = arith.constant 0 : index
      %10 = vector.load %arg2[%c0, %c0_3] : memref<32x126xf32, #tpu.memory_space<vmem>>, vector<32x126xf32>
      %c0_4 = arith.constant 0 : index
      %c0_5 = arith.constant 0 : index
      %11 = vector.load %arg3[%c0_4, %c0_5] : memref<126x126xf32, #tpu.memory_space<vmem>>, vector<126x126xf32>
      %cst = arith.constant dense<0.000000e+00> : vector<32x126xf32>
      %12 = tpu.matmul %10, %11, %cst {dimension_numbers = #tpu.dot_dimension_numbers<[1], [0], [0], [1], [0, 0, 1, 1], [], []>, precision = #tpu.contract_precision<fp32>} : vector<32x126xf32>, vector<126x126xf32>, vector<32x126xf32> -> vector<32x126xf32>
      %13 = arith.subf %10, %12 : vector<32x126xf32>
      %14 = math.exp %13 : vector<32x126xf32>
      %c0_6 = arith.constant 0 : index
      %c0_7 = arith.constant 0 : index
      %15 = vector.load %arg4[%c0_6, %c0_7] : memref<126x126xf32, #tpu.memory_space<vmem>>, vector<126x126xf32>
      %cst_8 = arith.constant dense<0.000000e+00> : vector<32x126xf32>
      %16 = tpu.matmul %14, %15, %cst_8 {dimension_numbers = #tpu.dot_dimension_numbers<[1], [0], [0], [1], [0, 0, 1, 1], [], []>, precision = #tpu.contract_precision<fp32>} : vector<32x126xf32>, vector<126x126xf32>, vector<32x126xf32> -> vector<32x126xf32>
      %cst_9 = arith.constant 1.000000e+01 : f32
      %17 = vector.broadcast %cst_9 : f32 to vector<32x126xf32>
      %18 = arith.cmpf olt, %16, %17 : vector<32x126xf32>
      %cst_10 = arith.constant 0.000000e+00 : f32
      %19 = vector.broadcast %cst_10 : f32 to vector<32x126xf32>
      %20 = arith.select %18, %10, %19 : vector<32x126xi1>, vector<32x126xf32>
      %c0_11 = arith.constant 0 : index
      %c0_12 = arith.constant 0 : index
      %c0_13 = arith.constant 0 : index
      %21 = vector.load %arg5[%c0_11, %c0_12, %c0_13] : memref<1x8x128xf32, #tpu.memory_space<vmem>>, vector<1x8x128xf32>
      %22 = vector.shape_cast %20 : vector<32x126xf32> to vector<1x32x126xf32>
      %cst_14 = arith.constant dense<0.000000e+00> : vector<1xf32>
      %23 = vector.multi_reduction <add>, %22, %cst_14 [1, 2] : vector<1x32x126xf32> to vector<1xf32>
      %24 = vector.shape_cast %23 : vector<1xf32> to vector<1x1x1xf32>
      %25 = vector.extract %24[0, 0, 0] : f32 from vector<1x1x1xf32>
      %26 = vector.broadcast %25 : f32 to vector<1x8x128xf32>
      %27 = arith.addf %21, %26 : vector<1x8x128xf32>
      %c0_15 = arith.constant 0 : index
      %c0_16 = arith.constant 0 : index
      %c0_17 = arith.constant 0 : index
      %28 = vector.load %arg5[%c0_15, %c0_16, %c0_17] : memref<1x8x128xf32, #tpu.memory_space<vmem>>, vector<1x8x128xf32>
      tpu.vector_store %arg5[%c0_15, %c0_16, %c0_17], %27 {strides = array<i32>} : memref<1x8x128xf32, #tpu.memory_space<vmem>>, vector<1x8x128xf32>,
    } else {
    }
    return
  }
  func.func @transform_0(%arg0: i32, %arg1: i32) -> (i32, i32) {
    %c4_i32 = arith.constant 4 : i32
    %0 = arith.muli %arg0, %c4_i32 : i32
    %1 = arith.addi %0, %arg1 : i32
    %c3_i32 = arith.constant 3 : i32
    %2 = arith.minsi %1, %c3_i32 : i32
    %c0_i32 = arith.constant 0 : i32
    %c0_i32_0 = arith.constant 0 : i32
    return %2, %c0_i32 : i32, i32
  }
  func.func @transform_1(%arg0: i32, %arg1: i32) -> (i32, i32) {
    %c0_i32 = arith.constant 0 : i32
    %c0_i32_0 = arith.constant 0 : i32
    %c0_i32_1 = arith.constant 0 : i32
    return %c0_i32, %c0_i32_0 : i32, i32
  }
  func.func @transform_2(%arg0: i32, %arg1: i32) -> (i32, i32) {
    %c0_i32 = arith.constant 0 : i32
    %c0_i32_0 = arith.constant 0 : i32
    %c0_i32_1 = arith.constant 0 : i32
    return %c0_i32, %c0_i32_0 : i32, i32
  }
  func.func @transform_3(%arg0: i32, %arg1: i32) -> (i32, i32, i32) {
    %c0_i32 = arith.constant 0 : i32
    %c0_i32_0 = arith.constant 0 : i32
    %c0_i32_1 = arith.constant 0 : i32
    return %arg0, %c0_i32, %c0_i32_0 : i32, i32, i32
  }
}

</mosaic_0001>

<bundles_post_ra>
// kernel: tpu_custom_call.1
= control target key start
LH: loop header
LB: loop body
LE: loop exit
PB: predicated region body
PF: predicated region fallthrough
CT: control target
= control target key end

     0   :  { %8 = vsyncpa [#allocation3], 0  ;;  %s2336_s0 = inlined_call_operand.hbm [shape: f32[128,126], index: 0, kind: input, shape index: {}]   ;;  %s2337_s1 = inlined_call_operand.hbm [shape: f32[126,126], index: 1, kind: input, shape index: {}]   ;;  %s2338_s2 = inlined_call_operand.hbm [shape: f32[126,126], index: 2, kind: input, shape index: {}]   ;;  %s2339_s3 = inlined_call_operand.hbm [shape: f32[1,8,128], index: 3, kind: output, shape index: {}]  }
   0x1   :  { %10 = vsyncpa [#allocation3 + $0x1], 0 }
   0x2   :  { %11 = vsyncpa [#allocation6], 0 }
   0x3   :  { %12 = vsyncpa [#allocation4], 0  ;;  %s1647_s12 = smov 0   ;;  %s1649_s13 = smov 0  }
   0x4   :  { %s1651_s14 = smov 0   ;;  %s1653_s15 = smov 0  }
   0x5   :  { %s1655_s16 = smov 0   ;;  %s1657_s17 = smov 0  }
   0x6 LB: > { %s2340_s18 = sadd.s32 4294967295, %s1619_s17   ;;  %p58_p0 = scmp.ne.s32.totalorder %s1603_s13, %s1599_s12  ;;  %s1619_s17 = sphi %s1657_s17, %s18_s17   ;;  %s1615_s16 = sphi %s1655_s16, %s2366_s16   ;;  %s1611_s15 = sphi %s1653_s15, %s2365_s15   ;;  %s1607_s14 = sphi %s1651_s14, %s2364_s14   ;;  %s1603_s13 = sphi %s1649_s13, %s2363_s13   ;;  %s1599_s12 = sphi %s1647_s12, %s2362_s12  }
   0x7   : > { %p1679_p1 = scmp.eq.s32.totalorder %s2340_s18, 0  ;;  %p1327_p2 = scmp.ge.s32.totalorder %s1619_s17, 1 }
   0x8   : > { %p137_p3 = scmp.lt.s32.totalorder %s1619_s17, 5  ;;  %s148_s23 = sshll.u32 %s2337_s1, 4  ;;  %s149_s23 = int_to_ptr.hbm [resolvable:$true] %s148_s23 }
   0x9   : > { %p1687_p4 = por %p1679_p1, %p58_p0  ;;  %s1621_s25 = smov [#allocation5]  }
   0xa   : > { %p1694_p5 = pnand %p1327_p2, %p137_p3  ;;  %s150_s26 = sshll.u32 %s1621_s25, 4  ;;  %s151_s26 = int_to_ptr.vmem [resolvable:$true] %s150_s26 }
   0xb   : > { %s162_s29 = sshll.u32 %s2338_s2, 4  ;;  %s1622_s30 = smov 128   ;;  %s163_s29 = int_to_ptr.hbm [resolvable:$true] %s162_s29 }
   0xc   : > { %p1362_p6 = pneg %p1694_p5  ;;  %s1623_s4 = smov 8  }
   0xd   : > { %s1624_s5 = smov [#allocation7]   ;;  %s27_s7 = sadd.s32 1, %s1615_s16 }
   0xe   : > { %p1363_p7 = pnand %p1362_p6, %p1679_p1  ;;  %s164_s6 = sshll.u32 %s1624_s5, 4  ;;  %s165_s6 = int_to_ptr.vmem [resolvable:$true] %s164_s6 }
   0xf   : > { %p36_p8 = scmp.lt.s32.totalorder %s1615_s16, 3  ;;  %p28_p9 = scmp.ge.s32.totalorder %s27_s7, 4 }
  0x10   : > { %1365 = dma.hbm_to_vmem [thread:$0]  (!%p1363_p7), %s149_s23, 2048, %s151_s26, [#allocation6], %s1622_s30, %s1622_s30, %s1623_s4  }
  0x11   : > { %1368 = dma.hbm_to_vmem [thread:$0]  (!%p1363_p7), %s163_s29, 2048, %s165_s6, [#allocation6], %s1622_s30, %s1622_s30, %s1623_s4  }
  0x12   : > { %s45_s8 = sadd.s32 1, %s1607_s14  ;;  %s2368_s7 = smov (%p28_p9, %s27_s7), 0 }
  0x13   : > { %s37_s9 = scalar_select %p36_p8, %s1615_s16, 3 }
  0x14   : > { %p52_p10 = scmp.ne.s32.totalorder %s1607_s14, %s1603_s13  ;;  %p53_p11 = scmp.eq.s32.totalorder %s1619_s17, 0 }
  0x15   : > { %p40_p12 = scmp.lt.s32.totalorder %s2368_s7, 3  ;;  %p1375_p13 = scmp.lt.s32.totalorder %s1619_s17, 4 }
  0x16   : > { %p1722_p0 = por %p53_p11, %p52_p10  ;;  %s178_s11 = sand.u32 1, %s1607_s14  }
  0x17   : > { %s41_s12 = scalar_select %p40_p12, %s2368_s7, 3 }
  0x18   : > { %s1331_s21 = sshll.u32 %s178_s11, 5  ;;  %s1345_s23 = sshll.u32 %s37_s9, 5 }
  0x19   : > { %s42_s22 = ssub.s32 %s37_s9, %s41_s12  ;;  %s191_s27 = scalar_lea.hbm %s2336_s0, %s1345_s23 }
  0x1a   : > { %p43_p2 = scmp.eq.s32.totalorder %s42_s22, 0  ;;  %s182_s28 = scalar_lea.vmem [#allocation2], %s1331_s21 }
  0x1b   : > { %s194_s29 = sshll.u32 %s182_s28, 4  ;;  %s192_s6 = sshll.u32 %s191_s27, 4  ;;  %s195_s29 = int_to_ptr.vmem [resolvable:$true] %s194_s29  ;;  %s193_s6 = int_to_ptr.hbm [resolvable:$true] %s192_s6 }
  0x1c   : > { %s1732_s5 = scalar_select %p43_p2, %s1607_s14, %s45_s8  }
  0x1d   : > { %p1370_p3 = pnand %p1375_p13, %p1722_p0  ;;  %s179_s18 = scalar_lea.sflag [#allocation3], %s178_s11 }
  0x1e   : > { %206 = sbr.rel (%p1694_p5) target bundleno = 666 (0x29a), region = 32  ;;  %s208_s9 = sand.u32 (!%p1694_p5), 1, %s1603_s13  }
  0x1f   : > { %1372 = dma.hbm_to_vmem [thread:$0]  (!%p1370_p3), %s193_s6, 512, %s195_s29, %s179_s18, %s1622_s30, %s1622_s30, %s1623_s4  }
  0x20   : > { %s1335_s12 = sshll.u32 (!%p1694_p5), %s208_s9, 5  ;;  %s209_s8 = scalar_lea.sflag (!%p1694_p5), [#allocation3], %s208_s9 }
  0x21   : > { %s1744_s21 = scalar_lea.vmem (!%p1694_p5), [#allocation2], %s1335_s12 }
  0x23   : > { %1586 = dma.done.wait (%p1687_p4), %s209_s8, 512  }
  0x24   : > { %1588 = vsyncadd (%p1687_p4), %s209_s8, 4294966784 }
  0x25   : > { %1590 = dma.done.wait (%p1679_p1), [#allocation6], 4096  }
  0x26   : > { %1592 = vsyncadd (%p1679_p1), [#allocation6], 4294963200  ;;  %p1338_p5 = scmp.ne.s32.totalorder %s1611_s15, 0 }
  0x28   : > { %249 = sbr.rel (%p1338_p5) target bundleno = 47 (0x2f), region = 48 }
  0x2d   : > { %v1625_v0 = vmov 0.0  }
  0x2e   : > { %250 = vst [vmem:[#allocation8] sm:$0xff] %v1625_v0 }
  0x2f PF: > { %s1339_s18 = sshll.u32 %s1611_s15, 5 }
  0x30   : > { %s254_s24 = ssub.s32 128, %s1339_s18 }
  0x31   : > { %p1340_p6 = scmp.le.s32.totalorder %s254_s24, 0 }
  0x33   : > { %258 = sbr.rel (%p1340_p6) target bundleno = 660 (0x294), region = 52 }
  0x38   : > { %v278_v1 = vld [vmem:[#allocation5 + $0x78] sm:$0x3f]  ;;  %vm292_vm0 = vcmask 1045504   ;;  %v277_v2 = vld [vmem:[#allocation5 + $0x70] sm:$0xff]  ;;  %v276_v3 = vld [vmem:[#allocation5 + $0x68] sm:$0xff]  ;;  %vm279_vm1 = vcmask 1031168  }
  0x39   : > { %v294_v4 = vsel %vm292_vm0, %v278_v1, 0  ;;  %v1757_v5 = vand.u32 4294901760, %v277_v2  ;;  %v1759_v6 = vand.u32 4294901760, %v276_v3  ;;  %v275_v7 = vld [vmem:[#allocation5 + $0x60] sm:$0xff]  ;;  %v274_v8 = vld [vmem:[#allocation5 + $0x58] sm:$0xff]  ;;  %v273_v9 = vld [vmem:[#allocation5 + $0x50] sm:$0xff] }
  0x3a   : > { %v1761_v10 = vand.u32 4294901760, %v294_v4  ;;  %v1763_v11 = vand.u32 4294901760, %v275_v7  ;;  %v1765_v12 = vand.u32 4294901760, %v274_v8  ;;  %v1767_v13 = vand.u32 4294901760, %v273_v9  ;;  %v272_v14 = vld [vmem:[#allocation5 + $0x48] sm:$0xff]  ;;  %v271_v15 = vld [vmem:[#allocation5 + $0x40] sm:$0xff] }
  0x3b   : > { %v1770_v16 = vsub.f32 %v277_v2, %v1757_v5  ;;  %v1773_v17 = vsub.f32 %v276_v3, %v1759_v6  ;;  %v1775_v18 = vand.u32 4294901760, %v272_v14  ;;  %v270_v22 = vld [vmem:[#allocation5 + $0x38] sm:$0xff]  ;;  %v1790_v25 = vand.u32 4294901760, %v271_v15  ;;  %v269_v32 = vld [vmem:[#allocation5 + $0x30] sm:$0xff]  ;;  %v268_v38 = vld [vmem:[#allocation5 + $0x28] sm:$0xff] }
  0x3c   : > { %297 = vmatpush.msra.mxu0 %v1761_v10  ;;  %v1779_v19 = vsub.f32 %v294_v4, %v1761_v10  ;;  %544 = vmatpush.msra.mxu3 %v1761_v10  ;;  %v1783_v20 = vsub.f32 %v275_v7, %v1763_v11  ;;  %v1786_v21 = vsub.f32 %v274_v8, %v1765_v12  ;;  %v1803_v30 = vand.u32 4294901760, %v270_v22  ;;  %v267_v45 = vld [vmem:[#allocation5 + $0x20] sm:$0xff]  ;;  %v266_v51 = vld [vmem:[#allocation5 + $0x18] sm:$0xff]  ;;  %v265_v58 = vld [vmem:[#allocation5 + $0x10] sm:$0xff] }
  0x3d   : > { %v369_v23 = vand.u32 4294901760, %v1770_v16  ;;  %v375_v24 = vand.u32 4294901760, %v1773_v17  ;;  %v1793_v26 = vsub.f32 %v273_v9, %v1767_v13  ;;  %v1806_v31 = vsub.f32 %v272_v14, %v1775_v18  ;;  %v1853_v55 = vld [vmem:[%s1744_s21] sm:$0xff]  ;;  %v264_v62 = vld [vmem:[#allocation5 + $0x8] sm:$0xff] }
  0x3e   : > { %299 = vmatpush.msra.mxu0 %v1757_v5  ;;  %476 = vmatpush.msra.mxu2 %v1779_v19  ;;  %v363_v27 = vand.u32 4294901760, %v1779_v19  ;;  %v381_v28 = vand.u32 4294901760, %v1783_v20  ;;  %v387_v35 = vand.u32 4294901760, %v1786_v21  ;;  %v1820_v37 = vsub.f32 %v271_v15, %v1790_v25  ;;  %v1875_v2 = vld [vmem:[%s1744_s21 + $0x8] sm:$0xff] }
  0x3f   : > { %546 = vmatpush.msra.mxu3 %v1757_v5  ;;  %v370_v29 = vsub.f32 %v1770_v16, %v369_v23  ;;  %v376_v34 = vsub.f32 %v1773_v17, %v375_v24  ;;  %v393_v36 = vand.u32 4294901760, %v1793_v26  ;;  %v1827_v42 = vand.u32 4294901760, %v269_v32 }
  0x40   : > { %301 = vmatpush.msra.mxu0 %v1759_v6  ;;  %479 = vmatpush.msra.mxu2 %v1770_v16  ;;  %v364_v33 = vsub.f32 %v1779_v19, %v363_v27  ;;  %v382_v41 = vsub.f32 %v1783_v20, %v381_v28  ;;  %v399_v43 = vand.u32 4294901760, %v1806_v31  ;;  %v1832_v44 = vsub.f32 %v270_v22, %v1803_v30  ;;  %v263_v22 = vld [vmem:[#allocation5] sm:$0xff] }
  0x41   : > { %548 = vmatpush.msra.mxu3 %v1759_v6  ;;  %v371_v40 = vand.u32 4294901760, %v370_v29  ;;  %v377_v46 = vand.u32 4294901760, %v376_v34  ;;  %v388_v47 = vsub.f32 %v1786_v21, %v387_v35  ;;  %v1838_v48 = vand.u32 4294901760, %v268_v38 }
  0x42   : > { %303 = vmatpush.msra.mxu0 %v1763_v11  ;;  %v365_v39 = vand.u32 4294901760, %v364_v33  ;;  %482 = vmatpush.msra.mxu2 %v1773_v17  ;;  %v394_v49 = vsub.f32 %v1793_v26, %v393_v36  ;;  %v405_v50 = vand.u32 4294901760, %v1820_v37  ;;  %v383_v52 = vand.u32 4294901760, %v382_v41 }
  0x43   : > { %550 = vmatpush.msra.mxu3 %v1763_v11  ;;  %v1847_v53 = vand.u32 4294901760, %v267_v45  ;;  %v1850_v54 = vsub.f32 %v269_v32, %v1827_v42  ;;  %v400_v56 = vsub.f32 %v1806_v31, %v399_v43  ;;  %v2347_v57 = vand.u32 4294901760, %v1832_v44 }
  0x44   : > { %305 = vmatpush.msra.mxu0 %v1765_v12  ;;  %366 = vmatpush.msra.mxu1 %v365_v39  ;;  %v389_v59 = vand.u32 4294901760, %v388_v47  ;;  %v1862_v60 = vand.u32 4294901760, %v266_v51  ;;  %v1865_v61 = vsub.f32 %v268_v38, %v1838_v48  ;;  %v395_v63 = vand.u32 4294901760, %v394_v49 }
  0x45   : > { %485 = vmatpush.msra.mxu2 %v1783_v20  ;;  %552 = vmatpush.msra.mxu3 %v1765_v12  ;;  %v406_v0 = vsub.f32 %v1820_v37, %v405_v50  ;;  %v281_v1 = vsel %vm279_vm1, %v1853_v55, 0  ;;  %v1878_v3 = vand.u32 4294901760, %v265_v58  ;;  %v2344_v4 = vand.u32 4294901760, %v1850_v54 }
  0x46   : > { %307 = vmatpush.msra.mxu0 %v1767_v13  ;;  %372 = vmatpush.msra.mxu1 %v371_v40  ;;  %v1882_v7 = vsub.f32 %v267_v45, %v1847_v53  ;;  %v1884_v8 = vand.u32 4294901760, %v281_v1  ;;  %v401_v9 = vand.u32 4294901760, %v400_v56  ;;  %v412_v14 = vsub.f32 %v1832_v44, %v2347_v57 }
  0x47   : > { %488 = vmatpush.msra.mxu2 %v1786_v21  ;;  %554 = vmatpush.msra.mxu3 %v1767_v13  ;;  %v1891_v15 = vand.u32 4294901760, %v264_v62  ;;  %v2343_v29 = vand.u32 4294901760, %v1865_v61  ;;  %v1896_v32 = vsub.f32 %v266_v51, %v1862_v60  ;;  %v284_v34 = vsel %vm279_vm1, %v1875_v2, 0 }
  0x48   : > { %309 = vmatpush.msra.mxu0 %v1775_v18  ;;  %378 = vmatpush.msra.mxu1 %v377_v46  ;;  %v1899_v33 = vsub.f32 %v281_v1, %v1884_v8  ;;  %v407_v38 = vand.u32 4294901760, %v406_v0  ;;  %v418_v39 = vsub.f32 %v1850_v54, %v2344_v4  ;;  %v1909_v40 = vand.u32 4294901760, %v263_v22 }
  0x49   : > { %491 = vmatpush.msra.mxu2 %v1793_v26  ;;  %556 = vmatpush.msra.mxu3 %v1775_v18  ;;  %v2342_v41 = vand.u32 4294901760, %v1882_v7  ;;  %v1913_v45 = vsub.f32 %v265_v58, %v1878_v3  ;;  %v1918_v47 = vand.u32 4294901760, %v284_v34  ;;  %v413_v49 = vand.u32 4294901760, %v412_v14  ;;  %v1931_v58 = vld [vmem:[%s1744_s21 + $0x10] sm:$0xff] }
  0x4a   : > { %311 = vmatpush.msra.mxu0 %v1790_v25  ;;  %384 = vmatpush.msra.mxu1 %v383_v52  ;;  %v330_v46 = vand.u32 4294901760, %v1899_v33  ;;  %v424_v51 = vsub.f32 %v1865_v61, %v2343_v29  ;;  %v2341_v52 = vand.u32 4294901760, %v1896_v32  ;;  %v1926_v56 = vsub.f32 %v264_v62, %v1891_v15 }
  0x4b   : > { %494 = vmatpush.msra.mxu2 %v1806_v31  ;;  %558 = vmatpush.msra.mxu3 %v1790_v25  ;;  %v2345_v0 = vand.u32 4294901760, %v1913_v45  ;;  %v1939_v1 = vsub.f32 %v263_v22, %v1909_v40  ;;  %v2355_v21 = vand.u32 4294901760, %v1865_v61 }
  0x4c   : > { %313 = vmatpush.msra.mxu0 %v1803_v30  ;;  %390 = vmatpush.msra.mxu1 %v389_v59  ;;  %v419_v59 = vand.u32 4294901760, %v418_v39  ;;  %v331_v62 = vsub.f32 %v1899_v33, %v330_v46  ;;  %v425_v14 = vand.u32 4294901760, %v424_v51  ;;  %v2346_v22 = vand.u32 4294901760, %v1926_v56 }
  0x4d   : > { %497 = vmatpush.msra.mxu2 %v1820_v37  ;;  %560 = vmatpush.msra.mxu3 %v1803_v30  ;;  %v287_v39 = vsel %vm279_vm1, %v1931_v58, 0  ;;  %v453_v51 = vand.u32 4294901760, %v1939_v1 }
  0x4e   : > { %315 = vmatpush.msra.mxu0 %v1827_v42  ;;  %396 = vmatpush.msra.mxu1 %v395_v63  ;;  %v430_v63 = vsub.f32 %v1882_v7, %v2342_v41  ;;  %v1963_v29 = vand.u32 4294901760, %v287_v39 }
  0x4f   : > { %500 = vmatpush.msra.mxu2 %v1832_v44  ;;  %562 = vmatpush.msra.mxu3 %v1827_v42 }
  0x50   : > { %317 = vmatpush.msra.mxu0 %v1838_v48  ;;  %402 = vmatpush.msra.mxu1 %v401_v9  ;;  %v337_v9 = vsub.f32 %v284_v34, %v1918_v47  ;;  %v431_v34 = vand.u32 4294901760, %v430_v63  ;;  %v1972_v63 = vld [vmem:[%s1744_s21 + $0x18] sm:$0xff] }
  0x51   : > { %503 = vmatpush.msra.mxu2 %v1850_v54  ;;  %564 = vmatpush.msra.mxu3 %v1838_v48  ;;  %v290_v57 = vsel %vm279_vm1, %v1972_v63, 0 }
  0x52   : > { %319 = vmatpush.msra.mxu0 %v1847_v53  ;;  %408 = vmatpush.msra.mxu1 %v407_v38  ;;  %v436_v38 = vsub.f32 %v1896_v32, %v2341_v52  ;;  %v332_v52 = vand.u32 4294901760, %v331_v62  ;;  %v338_v41 = vand.u32 4294901760, %v337_v9 }
  0x53   : > { %506 = vmatpush.msra.mxu2 %v1865_v61  ;;  %566 = vmatpush.msra.mxu3 %v1847_v53 }
  0x54   : > { %321 = vmatpush.msra.mxu0 %v1862_v60  ;;  %414 = vmatpush.msra.mxu1 %v413_v49  ;;  %v442_v49 = vsub.f32 %v1913_v45, %v2345_v0  ;;  %v437_v4 = vand.u32 4294901760, %v436_v38  ;;  %v454_v0 = vsub.f32 %v1939_v1, %v453_v51  ;;  %v345_v38 = vsub.f32 %v287_v39, %v1963_v29 }
  0x55   : > { %509 = vmatpush.msra.mxu2 %v1882_v7  ;;  %568 = vmatpush.msra.mxu3 %v1862_v60 }
  0x56   : > { %323 = vmatpush.msra.mxu0 %v1878_v3  ;;  %420 = vmatpush.msra.mxu1 %v419_v59  ;;  %v448_v59 = vsub.f32 %v1926_v56, %v2346_v22  ;;  %v443_v62 = vand.u32 4294901760, %v442_v49 }
  0x57   : > { %512 = vmatpush.msra.mxu2 %v1896_v32  ;;  %570 = vmatpush.msra.mxu3 %v1878_v3 }
  0x58   : > { %325 = vmatpush.msra.mxu0 %v1891_v15  ;;  %426 = vmatpush.msra.mxu1 %v425_v14  ;;  %v339_v14 = vsub.f32 %v337_v9, %v338_v41  ;;  %v449_v22 = vand.u32 4294901760, %v448_v59  ;;  %v749_v59 = vld [vmem:[#allocation7 + $0x38] sm:$0xff] }
  0x59   : > { %515 = vmatpush.msra.mxu2 %v1913_v45  ;;  %572 = vmatpush.msra.mxu3 %v1891_v15 }
  0x5a   : > { %327 = vmatpush.msra.mxu0 %v1909_v40  ;;  %432 = vmatpush.msra.mxu1 %v431_v34  ;;  %v340_v19 = vand.u32 4294901760, %v339_v14 }
  0x5b   : > { %333 = vmatmul.f32.vlgmr.msra.gmra.mxu0 %v332_v52  ;;  %518 = vmatpush.msra.mxu2 %v1926_v56  ;;  %v455_v52 = vand.u32 4294901760, %v454_v0 }
  0x5c   : > { %438 = vmatpush.msra.mxu1 %v437_v4  ;;  %603 = vmatpush.msrb.mxu0 %v363_v27  ;;  %v346_v27 = vand.u32 4294901760, %v345_v38  ;;  %v352_v4 = vand.u32 4294901760, %v290_v57 }
  0x5d   : > { %521 = vmatpush.msra.mxu2 %v1939_v1  ;;  %574 = vmatpush.msra.mxu3 %v1909_v40 }
  0x5e   : > { %444 = vmatpush.msra.mxu1 %v443_v62  ;;  %607 = vmatpush.msrb.mxu0 %v369_v23  ;;  %v347_v16 = vsub.f32 %v345_v38, %v346_v27  ;;  %v353_v23 = vsub.f32 %v290_v57, %v352_v4  ;;  %v753_v57 = vld [vmem:[#allocation7 + $0x58] sm:$0xff] }
  0x5f   : > { %524 = vmatmul.f32.vlgmr.msra.gmra.mxu2 %v1899_v33  ;;  %578 = vmatmul.f32.vlgmr.msra.gmra.mxu3 %v330_v46 }
  0x60   : > { %450 = vmatpush.msra.mxu1 %v449_v22  ;;  %611 = vmatpush.msrb.mxu0 %v375_v24  ;;  %v348_v17 = vand.u32 4294901760, %v347_v16  ;;  %v354_v20 = vand.u32 4294901760, %v353_v23  ;;  %v2359_v24 = vand.u32 4294901760, %v1926_v56 }
  0x62   : > { %456 = vmatpush.msra.mxu1 %v455_v52  ;;  %615 = vmatpush.msrb.mxu0 %v381_v28 }
  0x63   : > { %341 = vmatmul.f32.gmra.mxu0 %v340_v19  ;;  %458 = vmatmul.f32.vlgmr.msra.gmra.mxu1 %v1884_v8  ;;  %v2131_v19 = vand.u32 4294901760, %v749_v59 }
  0x64   : > { %682 = vmatpush.msrb.mxu1 %v1761_v10  ;;  %619 = vmatpush.msrb.mxu0 %v387_v35  ;;  %v2353_v10 = vand.u32 4294901760, %v1832_v44  ;;  %v754_v44 = vld [vmem:[#allocation7 + $0x60] sm:$0xff] }
  0x66   : > { %684 = vmatpush.msrb.mxu1 %v1757_v5  ;;  %623 = vmatpush.msrb.mxu0 %v393_v36  ;;  %v355_v5 = vsub.f32 %v353_v23, %v354_v20  ;;  %v755_v36 = vld [vmem:[#allocation7 + $0x68] sm:$0xff] }
  0x67   : > { %529 = vmatmul.f32.gmra.mxu2 %v337_v9  ;;  %584 = vmatmul.f32.gmra.mxu3 %v338_v41  ;;  %v750_v9 = vld [vmem:[#allocation7 + $0x40] sm:$0xff] }
  0x68   : > { %686 = vmatpush.msrb.mxu1 %v1759_v6  ;;  %627 = vmatpush.msrb.mxu0 %v399_v43  ;;  %v2354_v6 = vand.u32 4294901760, %v1850_v54  ;;  %v2059_v43 = vand.u32 4294901760, %v755_v36  ;;  %v2071_v54 = vand.u32 4294901760, %v754_v44  ;;  %v2114_v49 = vand.u32 4294901760, %v750_v9 }
  0x6a   : > { %688 = vmatpush.msrb.mxu1 %v1763_v11  ;;  %631 = vmatpush.msrb.mxu0 %v405_v50  ;;  %v356_v11 = vand.u32 4294901760, %v355_v5  ;;  %v2129_v52 = vsub.f32 %v750_v9, %v2114_v49 }
  0x6b   : > { %349 = vmatmul.f32.gmra.mxu0 %v348_v17  ;;  %462 = vmatmul.f32.gmra.mxu1 %v1918_v47 }
  0x6c   : > { %690 = vmatpush.msrb.mxu1 %v1765_v12  ;;  %635 = vmatpush.msrb.mxu0 %v2353_v10  ;;  %v2356_v12 = vand.u32 4294901760, %v1882_v7  ;;  %v2080_v7 = vsub.f32 %v754_v44, %v2071_v54  ;;  %v882_v17 = vand.u32 4294901760, %v2129_v52  ;;  %v747_v10 = vld [vmem:[#allocation7 + $0x28] sm:$0xff]  ;;  %v745_v44 = vld [vmem:[#allocation7 + $0x18] sm:$0xff] }
  0x6e   : > { %692 = vmatpush.msrb.mxu1 %v1767_v13  ;;  %639 = vmatpush.msrb.mxu0 %v2354_v6  ;;  %v2357_v13 = vand.u32 4294901760, %v1896_v32  ;;  %v858_v33 = vand.u32 4294901760, %v2080_v7 }
  0x6f   : > { %534 = vmatmul.f32.gmra.mxu2 %v345_v38  ;;  %590 = vmatmul.f32.gmra.mxu3 %v346_v27 }
  0x70   : > { %694 = vmatpush.msrb.mxu1 %v1775_v18  ;;  %643 = vmatpush.msrb.mxu0 %v2355_v21  ;;  %v2358_v18 = vand.u32 4294901760, %v1913_v45  ;;  %v751_v45 = vld [vmem:[#allocation7 + $0x48] sm:$0xff] }
  0x71   : > { %v2105_v0 = vand.u32 4294901760, %v751_v45 }
  0x72   : > { %696 = vmatpush.msrb.mxu1 %v1790_v25  ;;  %647 = vmatpush.msrb.mxu0 %v2356_v12  ;;  %v757_v25 = vld [vmem:[#allocation7 + $0x78] sm:$0x3f]  ;;  %v2151_v12 = vand.u32 4294901760, %v747_v10 }
  0x73   : > { %357 = vmatmul.f32.gmra.mxu0 %v356_v11  ;;  %466 = vmatmul.f32.gmra.mxu1 %v1963_v29  ;;  %v771_v26 = vsel %vm292_vm0, %v757_v25, 0  ;;  %v2112_v34 = vsub.f32 %v751_v45, %v2105_v0  ;;  %v883_v11 = vsub.f32 %v2129_v52, %v882_v17  ;;  %v744_v45 = vld [vmem:[#allocation7 + $0x10] sm:$0xff] }
  0x74   : > { %698 = vmatpush.msrb.mxu1 %v1803_v30  ;;  %651 = vmatpush.msrb.mxu0 %v2357_v13  ;;  %v2045_v28 = vand.u32 4294901760, %v771_v26  ;;  %v756_v30 = vld [vmem:[#allocation7 + $0x70] sm:$0xff] }
  0x75   : > { %v2050_v35 = vand.u32 4294901760, %v756_v30  ;;  %v876_v38 = vand.u32 4294901760, %v2112_v34 }
  0x76   : > { %700 = vmatpush.msrb.mxu1 %v1827_v42  ;;  %655 = vmatpush.msrb.mxu0 %v2358_v18  ;;  %v2048_v31 = vsub.f32 %v771_v26, %v2045_v28  ;;  %v746_v18 = vld [vmem:[#allocation7 + $0x20] sm:$0xff]  ;;  %v2163_v26 = vsub.f32 %v747_v10, %v2151_v12 }
  0x77   : > { %539 = vmatmul.f32.gmra.mxu2 %v353_v23  ;;  %596 = vmatmul.f32.gmra.mxu3 %v354_v20  ;;  %v2056_v42 = vsub.f32 %v756_v30, %v2050_v35  ;;  %v877_v23 = vsub.f32 %v2112_v34, %v876_v38  ;;  %v2141_v20 = vsub.f32 %v749_v59, %v2131_v19  ;;  %v2165_v30 = vand.u32 4294901760, %v746_v18  ;;  %v743_v59 = vld [vmem:[#allocation7 + $0x8] sm:$0xff]  ;;  %v742_v10 = vld [vmem:[#allocation7] sm:$0xff] }
  0x78   : > { %702 = vmatpush.msrb.mxu1 %v1838_v48  ;;  %659 = vmatpush.msrb.mxu0 %v2359_v24  ;;  %v840_v37 = vand.u32 4294901760, %v2048_v31  ;;  %v884_v24 = vand.u32 4294901760, %v883_v11 }
  0x79   : > { %774 = vmatpush.msrb.mxu2 %v2045_v28  ;;  %v846_v50 = vand.u32 4294901760, %v2056_v42  ;;  %v878_v6 = vand.u32 4294901760, %v877_v23  ;;  %v888_v21 = vand.u32 4294901760, %v2141_v20  ;;  %v2209_v23 = vand.u32 4294901760, %v743_v59 }
  0x7a   : > { %704 = vmatpush.msrb.mxu1 %v1847_v53  ;;  %663 = vmatpush.msrb.mxu0 %v453_v51  ;;  %v841_v48 = vsub.f32 %v2048_v31, %v840_v37  ;;  %v2068_v53 = vsub.f32 %v755_v36, %v2059_v43 }
  0x7b   : > { %470 = vmatmul.f32.gmra.mxu1 %v352_v4  ;;  %665 = vmatmul.f32.vlgmr.msrb.gmra.mxu0 %v1884_v8  ;;  %v847_v61 = vsub.f32 %v2056_v42, %v846_v50  ;;  %v889_v25 = vsub.f32 %v2141_v20, %v888_v21 }
  0x7c   : > { %706 = vmatpush.msrb.mxu1 %v1862_v60  ;;  %953 = vmatpush.msra.mxu0 %v2048_v31  ;;  %v842_v60 = vand.u32 4294901760, %v841_v48 }
  0x7d   : > { %776 = vmatpush.msrb.mxu2 %v2050_v35 }
  0x7e   : > { %708 = vmatpush.msrb.mxu1 %v1878_v3  ;;  %956 = vmatpush.msra.mxu0 %v2056_v42  ;;  %v852_v3 = vand.u32 4294901760, %v2068_v53 }
  0x7f   : > { %778 = vmatpush.msrb.mxu2 %v2059_v43  ;;  %843 = vmatpush.msrb.mxu3 %v842_v60  ;;  %v890_v60 = vand.u32 4294901760, %v889_v25  ;;  %v2220_v25 = vsub.f32 %v743_v59, %v2209_v23 }
  0x80   : > { %710 = vmatpush.msrb.mxu1 %v1891_v15  ;;  %959 = vmatpush.msra.mxu0 %v2068_v53  ;;  %v752_v15 = vld [vmem:[#allocation7 + $0x50] sm:$0xff]  ;;  %v853_v32 = vsub.f32 %v2068_v53, %v852_v3 }
  0x81   : > { %780 = vmatpush.msrb.mxu2 %v2071_v54 }
  0x82   : > { %712 = vmatpush.msrb.mxu1 %v1909_v40  ;;  %962 = vmatpush.msra.mxu0 %v2080_v7  ;;  %v2092_v40 = vand.u32 4294901760, %v752_v15  ;;  %v854_v46 = vand.u32 4294901760, %v853_v32 }
  0x83   : > { %669 = vmatmul.f32.gmra.mxu0 %v1918_v47  ;;  %714 = vmatmul.f32.vlgmr.msrb.gmra.mxu1 %v1884_v8  ;;  %v2084_v8 = vand.u32 4294901760, %v753_v57 }
  0x84   : > { %1021 = vmatpush.msra.mxu1 %v2045_v28  ;;  %v2103_v56 = vsub.f32 %v752_v15, %v2092_v40  ;;  %v2177_v15 = vsub.f32 %v746_v18, %v2165_v30 }
  0x85   : > { %v2095_v41 = vsub.f32 %v753_v57, %v2084_v8  ;;  %782 = vmatpush.msrb.mxu2 %v2084_v8 }
  0x86   : > { %1023 = vmatpush.msra.mxu1 %v2050_v35  ;;  %v870_v39 = vand.u32 4294901760, %v2103_v56 }
  0x87   : > { %v864_v1 = vand.u32 4294901760, %v2095_v41  ;;  %965 = vmatpush.msra.mxu0 %v2095_v41  ;;  %784 = vmatpush.msrb.mxu2 %v2092_v40 }
  0x88   : > { %1025 = vmatpush.msra.mxu1 %v2059_v43  ;;  %v871_v14 = vsub.f32 %v2103_v56, %v870_v39 }
  0x89   : > { %v865_v51 = vsub.f32 %v2095_v41, %v864_v1  ;;  %968 = vmatpush.msra.mxu0 %v2103_v56  ;;  %786 = vmatpush.msrb.mxu2 %v2105_v0 }
  0x8a   : > { %1027 = vmatpush.msra.mxu1 %v2071_v54  ;;  %v872_v16 = vand.u32 4294901760, %v871_v14 }
  0x8b   : > { %673 = vmatmul.f32.gmra.mxu0 %v1963_v29  ;;  %718 = vmatmul.f32.gmra.mxu1 %v1918_v47  ;;  %v859_v47 = vsub.f32 %v2080_v7, %v858_v33  ;;  %v866_v27 = vand.u32 4294901760, %v865_v51 }
  0x8c   : > { %1029 = vmatpush.msra.mxu1 %v2084_v8  ;;  %971 = vmatpush.msra.mxu0 %v2112_v34 }
  0x8d   : > { %v860_v22 = vand.u32 4294901760, %v859_v47  ;;  %788 = vmatpush.msrb.mxu2 %v2114_v49  ;;  %v906_v47 = vand.u32 4294901760, %v2177_v15 }
  0x8e   : > { %1031 = vmatpush.msra.mxu1 %v2092_v40  ;;  %974 = vmatpush.msra.mxu0 %v2129_v52 }
  0x8f   : > { %790 = vmatpush.msrb.mxu2 %v2131_v19 }
  0x90   : > { %1033 = vmatpush.msra.mxu1 %v2105_v0  ;;  %977 = vmatpush.msra.mxu0 %v2141_v20 }
  0x92   : > { %1035 = vmatpush.msra.mxu1 %v2114_v49 }
  0x93   : > { %677 = vmatmul.f32.gmra.mxu0 %v352_v4  ;;  %722 = vmatmul.f32.gmra.mxu1 %v1963_v29  ;;  %v848_v29 = vand.u32 4294901760, %v847_v61  ;;  %v900_v61 = vand.u32 4294901760, %v2163_v26 }
  0x94   : > { %1037 = vmatpush.msra.mxu1 %v2131_v19 }
  0x95   : > { %849 = vmatpush.msrb.mxu3 %v848_v29  ;;  %v2179_v29 = vand.u32 4294901760, %v745_v44 }
  0x97   : > { %855 = vmatpush.msrb.mxu3 %v854_v46  ;;  %v901_v46 = vsub.f32 %v2163_v26, %v900_v61  ;;  %v2192_v9 = vsub.f32 %v745_v44, %v2179_v29 }
  0x99   : > { %861 = vmatpush.msrb.mxu3 %v860_v22  ;;  %v2194_v22 = vand.u32 4294901760, %v744_v45  ;;  %v902_v14 = vand.u32 4294901760, %v901_v46 }
  0x9b   : > { %726 = vmatmul.f32.gmra.mxu1 %v352_v4  ;;  %v748_v4 = vld [vmem:[#allocation7 + $0x30] sm:$0xff]  ;;  %867 = vmatpush.msrb.mxu3 %v866_v27  ;;  %v907_v27 = vsub.f32 %v2177_v15, %v906_v47 }
  0x9c   : > { %v2145_v5 = vand.u32 4294901760, %v748_v4 }
  0x9d   : > { %873 = vmatpush.msrb.mxu3 %v872_v16  ;;  %v2204_v16 = vsub.f32 %v744_v45, %v2194_v22 }
  0x9e   : > { %v2156_v13 = vsub.f32 %v748_v4, %v2145_v5  ;;  %1039 = vmatpush.msra.mxu1 %v2145_v5  ;;  %792 = vmatpush.msrb.mxu2 %v2145_v5  ;;  %v912_v4 = vand.u32 4294901760, %v2192_v9 }
  0x9f   : > { %879 = vmatpush.msrb.mxu3 %v878_v6  ;;  %v908_v6 = vand.u32 4294901760, %v907_v27  ;;  %v2348_v18 = vand.u32 4294901760, %v2204_v16  ;;  %v2360_v34 = vand.u32 4294901760, %v2204_v16 }
  0xa0   : > { %v894_v36 = vand.u32 4294901760, %v2156_v13  ;;  %980 = vmatpush.msra.mxu0 %v2156_v13  ;;  %1041 = vmatpush.msra.mxu1 %v2151_v12  ;;  %v913_v11 = vsub.f32 %v2192_v9, %v912_v4 }
  0xa1   : > { %794 = vmatpush.msrb.mxu2 %v2151_v12  ;;  %885 = vmatpush.msrb.mxu3 %v884_v24  ;;  %v2215_v24 = vand.u32 4294901760, %v742_v10  ;;  %v919_v45 = vsub.f32 %v2204_v16, %v2348_v18 }
  0xa2   : > { %v895_v32 = vsub.f32 %v2156_v13, %v894_v36  ;;  %983 = vmatpush.msra.mxu0 %v2163_v26  ;;  %1043 = vmatpush.msra.mxu1 %v2165_v30 }
  0xa3   : > { %796 = vmatpush.msrb.mxu2 %v2165_v30  ;;  %891 = vmatpush.msrb.mxu3 %v890_v60  ;;  %v2229_v46 = vsub.f32 %v742_v10, %v2215_v24  ;;  %v920_v59 = vand.u32 4294901760, %v919_v45 }
  0xa4   : > { %v896_v51 = vand.u32 4294901760, %v895_v32  ;;  %986 = vmatpush.msra.mxu0 %v2177_v15  ;;  %1045 = vmatpush.msra.mxu1 %v2179_v29  ;;  %v914_v32 = vand.u32 4294901760, %v913_v11 }
  0xa5   : > { %798 = vmatpush.msrb.mxu2 %v2179_v29 }
  0xa6   : > { %897 = vmatpush.msrb.mxu3 %v896_v51  ;;  %989 = vmatpush.msra.mxu0 %v2192_v9  ;;  %v924_v51 = vand.u32 4294901760, %v2220_v25 }
  0xa7   : > { %1047 = vmatpush.msra.mxu1 %v2194_v22  ;;  %800 = vmatpush.msrb.mxu2 %v2194_v22 }
  0xa8   : > { %903 = vmatpush.msrb.mxu3 %v902_v14  ;;  %992 = vmatpush.msra.mxu0 %v2204_v16  ;;  %v930_v14 = vand.u32 4294901760, %v2229_v46  ;;  %v925_v27 = vsub.f32 %v2220_v25, %v924_v51 }
  0xa9   : > { %1049 = vmatpush.msra.mxu1 %v2209_v23  ;;  %802 = vmatpush.msrb.mxu2 %v2209_v23 }
  0xaa   : > { %909 = vmatpush.msrb.mxu3 %v908_v6  ;;  %995 = vmatpush.msra.mxu0 %v2220_v25  ;;  %v931_v10 = vsub.f32 %v2229_v46, %v930_v14  ;;  %v926_v6 = vand.u32 4294901760, %v925_v27 }
  0xab   : > { %1051 = vmatpush.msra.mxu1 %v2215_v24  ;;  %804 = vmatpush.msrb.mxu2 %v2215_v24 }
  0xac   : > { %915 = vmatpush.msrb.mxu3 %v914_v32  ;;  %998 = vmatpush.msra.mxu0 %v2229_v46  ;;  %v932_v11 = vand.u32 4294901760, %v931_v10 }
  0xad   : > { %1080 = vmatpush.msra.mxu2 %v840_v37 }
  0xae   : > { %921 = vmatpush.msrb.mxu3 %v920_v59 }
  0xaf   : > { %1084 = vmatpush.msra.mxu2 %v846_v50 }
  0xb0   : > { %927 = vmatpush.msrb.mxu3 %v926_v6 }
  0xb1   : > { %1088 = vmatpush.msra.mxu2 %v852_v3 }
  0xb2   : > { %933 = vmatpush.msrb.mxu3 %v932_v11 }
  0xb3   : > { %1092 = vmatpush.msra.mxu2 %v858_v33 }
  0xb4   : > { %1159 = vmatpush.msra.mxu3 %v2045_v28 }
  0xb5   : > { %1096 = vmatpush.msra.mxu2 %v864_v1 }
  0xb6   : > { %1161 = vmatpush.msra.mxu3 %v2050_v35 }
  0xb7   : > { %1100 = vmatpush.msra.mxu2 %v870_v39 }
  0xb8   : > { %1163 = vmatpush.msra.mxu3 %v2059_v43 }
  0xb9   : > { %1104 = vmatpush.msra.mxu2 %v876_v38 }
  0xba   : > { %1165 = vmatpush.msra.mxu3 %v2071_v54 }
  0xbb   : > { %1108 = vmatpush.msra.mxu2 %v882_v17 }
  0xbc   : > { %1167 = vmatpush.msra.mxu3 %v2084_v8 }
  0xbd   : > { %1112 = vmatpush.msra.mxu2 %v888_v21 }
  0xbe   : > { %1169 = vmatpush.msra.mxu3 %v2092_v40 }
  0xbf   : > { %1116 = vmatpush.msra.mxu2 %v894_v36 }
  0xc0   : > { %1171 = vmatpush.msra.mxu3 %v2105_v0 }
  0xc1   : > { %1120 = vmatpush.msra.mxu2 %v900_v61 }
  0xc2   : > { %1173 = vmatpush.msra.mxu3 %v2114_v49 }
  0xc3   : > { %1124 = vmatpush.msra.mxu2 %v906_v47 }
  0xc4   : > { %1175 = vmatpush.msra.mxu3 %v2131_v19 }
  0xc5   : > { %1128 = vmatpush.msra.mxu2 %v912_v4 }
  0xc6   : > { %1177 = vmatpush.msra.mxu3 %v2145_v5 }
  0xc7   : > { %1132 = vmatpush.msra.mxu2 %v2360_v34 }
  0xc8   : > { %1179 = vmatpush.msra.mxu3 %v2151_v12 }
  0xc9   : > { %1136 = vmatpush.msra.mxu2 %v924_v51 }
  0xca   : > { %1181 = vmatpush.msra.mxu3 %v2165_v30 }
  0xcb   : > { %1140 = vmatpush.msra.mxu2 %v930_v14 }
  0xcc   : > { %1183 = vmatpush.msra.mxu3 %v2179_v29 }
  0xce   : > { %1185 = vmatpush.msra.mxu3 %v2194_v22 }
  0xd0   : > { %1187 = vmatpush.msra.mxu3 %v2209_v23 }
  0xd2   : > { %1189 = vmatpush.msra.mxu3 %v2215_v24 }
  0xd8   : > { %v2122_v62 = vpop.f32.mrf.mxu0 }
  0xe0   : > { %v2171_v48 = vpop.f32.mrf.mxu0  ;;  %v2173_v57 = vpop.f32.mrf.mxu1 }
  0xe1   : > { %v460_v37 = vadd.f32 %v2173_v57, %v2122_v62 }
  0xe2   : > { %v525_v32 = vpop.f32.mrf.mxu2  ;;  %v579_v31 = vpop.f32.mrf.mxu3 }
  0xe3   : > { %v526_v28 = vadd.f32 %v525_v32, %v460_v37 }
  0xe5   : > { %v580_v43 = vadd.f32 %v579_v31, %v526_v28 }
  0xe8   : > { %v2223_v44 = vpop.f32.mrf.mxu0  ;;  %v463_v60 = vpop.f32.mrf.mxu1 }
  0xe9   : > { %v464_v53 = vadd.f32 %v463_v60, %v2171_v48 }
  0xea   : > { %v530_v35 = vpop.f32.mrf.mxu2  ;;  %v585_v3 = vpop.f32.mrf.mxu3 }
  0xeb   : > { %v531_v33 = vadd.f32 %v530_v35, %v464_v53 }
  0xed   : > { %v586_v0 = vadd.f32 %v585_v3, %v531_v33 }
  0xf0   : > { %v358_v45 = vpop.f32.mrf.mxu0  ;;  %v467_v18 = vpop.f32.mrf.mxu1 }
  0xf1   : > { %v468_v1 = vadd.f32 %v467_v18, %v2223_v44 }
  0xf2   : > { %v535_v56 = vpop.f32.mrf.mxu2  ;;  %v591_v62 = vpop.f32.mrf.mxu3 }
  0xf8   : > { %v471_v42 = vpop.f32.mrf.mxu1  ;;  %v666_v50 = vpop.f32.mrf.mxu0 }
  0xf9   : > { %v667_v54 = vadd.f32 %v666_v50, %v580_v43  ;;  %v472_v21 = vadd.f32 %v471_v42, %v358_v45 }
  0xfa   : > { %v540_v13 = vpop.f32.mrf.mxu2  ;;  %v597_v29 = vpop.f32.mrf.mxu3 }
  0xfb   : > { %v541_v57 = vadd.f32 %v540_v13, %v472_v21 }
  0xfd   : > { %v598_v16 = vadd.f32 %v597_v29, %v541_v57 }
 0x100   : > { %v670_v7 = vpop.f32.mrf.mxu0  ;;  %v715_v8 = vpop.f32.mrf.mxu1 }
 0x101   : > { %v716_v40 = vadd.f32 %v715_v8, %v667_v54  ;;  %v671_v49 = vadd.f32 %v670_v7, %v586_v0 }
 0x103   : > { %v730_v41 = vsub.f32 %v1853_v55, %v716_v40  ;;  %v536_v55 = vadd.f32 %v535_v56, %v468_v1 }
 0x105   : > { %v734_v39 = vmul.f32 1.442695, %v730_v41  ;;  %v592_v5 = vadd.f32 %v591_v62, %v536_v55 }
 0x107   : > { %1434 = vpow2.f32 %v734_v39 }
 0x108   : > { %v719_v38 = vpop.f32.mrf.mxu1  ;;  %v674_v19 = vpop.f32.mrf.mxu0 }
 0x109   : > { %v720_v52 = vadd.f32 %v719_v38, %v671_v49  ;;  %v675_v30 = vadd.f32 %v674_v19, %v592_v5 }
 0x10b   : > { %v731_v17 = vsub.f32 %v1875_v2, %v720_v52 }
 0x10d   : > { %v1435_v20 = vpop.eup %1434  ;;  %v736_v12 = vmul.f32 1.442695, %v731_v17 }
 0x10e   : > { %v759_v26 = vsel %vm279_vm1, %v1435_v20, 0 }
 0x10f   : > { %1436 = vpow2.f32 %v736_v12  ;;  %v805_v36 = vand.u32 4294901760, %v759_v26 }
 0x110   : > { %v723_v48 = vpop.f32.mrf.mxu1  ;;  %v678_v22 = vpop.f32.mrf.mxu0 }
 0x111   : > { %v724_v61 = vadd.f32 %v723_v48, %v675_v30  ;;  %935 = vmatmul.f32.vlgmr.msrb.gmra.mxu3 %v805_v36  ;;  %v806_v15 = vsub.f32 %v759_v26, %v805_v36  ;;  %v679_v44 = vadd.f32 %v678_v22, %v598_v16 }
 0x113   : > { %v732_v47 = vsub.f32 %v1931_v58, %v724_v61  ;;  %1001 = vmatmul.f32.vlgmr.msra.gmra.mxu0 %v806_v15  ;;  %v807_v9 = vand.u32 4294901760, %v806_v15 }
 0x115   : > { %v1437_v4 = vpop.eup %1436  ;;  %v738_v18 = vmul.f32 1.442695, %v732_v47  ;;  %1055 = vmatmul.f32.vlgmr.msra.gmra.mxu1 %v807_v9  ;;  %v808_v23 = vsub.f32 %v806_v15, %v807_v9 }
 0x116   : > { %v762_v25 = vsel %vm279_vm1, %v1437_v4, 0 }
 0x117   : > { %1438 = vpow2.f32 %v738_v18  ;;  %v809_v24 = vand.u32 4294901760, %v808_v23  ;;  %v813_v60 = vand.u32 4294901760, %v762_v25 }
 0x118   : > { %v727_v46 = vpop.f32.mrf.mxu1 }
 0x119   : > { %v728_v51 = vadd.f32 %v727_v46, %v679_v44  ;;  %810 = vmatmul.f32.vlgmr.msrb.gmra.mxu2 %v809_v24  ;;  %939 = vmatmul.f32.gmra.mxu3 %v813_v60  ;;  %v814_v59 = vsub.f32 %v762_v25, %v813_v60 }
 0x11b   : > { %v733_v14 = vsub.f32 %v1972_v63, %v728_v51  ;;  %1006 = vmatmul.f32.gmra.mxu0 %v814_v59  ;;  %v815_v27 = vand.u32 4294901760, %v814_v59 }
 0x11d   : > { %v1439_v10 = vpop.eup %1438  ;;  %v740_v6 = vmul.f32 1.442695, %v733_v14  ;;  %1061 = vmatmul.f32.gmra.mxu1 %v815_v27  ;;  %v816_v11 = vsub.f32 %v814_v59, %v815_v27  ;;  %v1442_v59 = vld [vmem:[%s1744_s21] sm:$0xff] }
 0x11e   : > { %v765_v32 = vsel %vm279_vm1, %v1439_v10, 0 }
 0x11f   : > { %1440 = vpow2.f32 %v740_v6  ;;  %v817_v45 = vand.u32 4294901760, %v816_v11  ;;  %v821_v31 = vand.u32 4294901760, %v765_v32 }
 0x121   : > { %818 = vmatmul.f32.gmra.mxu2 %v817_v45  ;;  %943 = vmatmul.f32.gmra.mxu3 %v821_v31  ;;  %v822_v37 = vsub.f32 %v765_v32, %v821_v31 }
 0x123   : > { %1011 = vmatmul.f32.gmra.mxu0 %v822_v37  ;;  %v823_v42 = vand.u32 4294901760, %v822_v37 }
 0x125   : > { %v1441_v50 = vpop.eup %1440  ;;  %1067 = vmatmul.f32.gmra.mxu1 %v823_v42  ;;  %v824_v28 = vsub.f32 %v822_v37, %v823_v42 }
 0x126   : > { %v768_v35 = vsel %vm279_vm1, %v1441_v50, 0 }
 0x127   : > { %v825_v43 = vand.u32 4294901760, %v824_v28  ;;  %v829_v53 = vand.u32 4294901760, %v768_v35 }
 0x129   : > { %826 = vmatmul.f32.gmra.mxu2 %v825_v43  ;;  %947 = vmatmul.f32.gmra.mxu3 %v829_v53  ;;  %v830_v3 = vsub.f32 %v768_v35, %v829_v53 }
 0x12b   : > { %1016 = vmatmul.f32.gmra.mxu0 %v830_v3  ;;  %v831_v54 = vand.u32 4294901760, %v830_v3 }
 0x12d   : > { %1073 = vmatmul.f32.gmra.mxu1 %v831_v54  ;;  %v832_v7 = vsub.f32 %v830_v3, %v831_v54 }
 0x12f   : > { %v833_v8 = vand.u32 4294901760, %v832_v7 }
 0x131   : > { %834 = vmatmul.f32.gmra.mxu2 %v833_v8  ;;  %1191 = vmatmul.f32.vlgmr.msra.gmra.mxu3 %v805_v36 }
 0x139   : > { %1142 = vmatmul.f32.vlgmr.msra.gmra.mxu2 %v805_v36  ;;  %1195 = vmatmul.f32.gmra.mxu3 %v813_v60 }
 0x141   : > { %1146 = vmatmul.f32.gmra.mxu2 %v813_v60  ;;  %1199 = vmatmul.f32.gmra.mxu3 %v821_v31 }
 0x149   : > { %1150 = vmatmul.f32.gmra.mxu2 %v821_v31  ;;  %1203 = vmatmul.f32.gmra.mxu3 %v829_v53 }
 0x151   : > { %1154 = vmatmul.f32.gmra.mxu2 %v829_v53 }
 0x190   : > { %v1002_v34 = vpop.f32.mrf.mxu0 }
 0x192   : > { %v1056_v49 = vpop.f32.mrf.mxu1 }
 0x194   : > { %v936_v33 = vpop.f32.mrf.mxu3 }
 0x198   : > { %v1007_v55 = vpop.f32.mrf.mxu0 }
 0x19a   : > { %v1062_v17 = vpop.f32.mrf.mxu1 }
 0x19c   : > { %v811_v40 = vpop.f32.mrf.mxu2  ;;  %v940_v41 = vpop.f32.mrf.mxu3 }
 0x19d   : > { %v937_v20 = vadd.f32 %v936_v33, %v811_v40  ;;  %v1215_v33 = vld [vmem:[#allocation8] sm:$0xff] }
 0x19f   : > { %v1003_v12 = vadd.f32 %v1002_v34, %v937_v20 }
 0x1a0   : > { %v1012_v26 = vpop.f32.mrf.mxu0 }
 0x1a1   : > { %v1057_v57 = vadd.f32 %v1056_v49, %v1003_v12 }
 0x1a2   : > { %v1068_v15 = vpop.f32.mrf.mxu1 }
 0x1a4   : > { %v819_v56 = vpop.f32.mrf.mxu2  ;;  %v944_v0 = vpop.f32.mrf.mxu3 }
 0x1a5   : > { %v941_v19 = vadd.f32 %v940_v41, %v819_v56 }
 0x1a7   : > { %v1008_v5 = vadd.f32 %v1007_v55, %v941_v19 }
 0x1a8   : > { %v1017_v25 = vpop.f32.mrf.mxu0 }
 0x1a9   : > { %v1063_v36 = vadd.f32 %v1062_v17, %v1008_v5 }
 0x1aa   : > { %v1074_v60 = vpop.f32.mrf.mxu1 }
 0x1ac   : > { %v827_v1 = vpop.f32.mrf.mxu2  ;;  %v948_v39 = vpop.f32.mrf.mxu3 }
 0x1ad   : > { %v945_v13 = vadd.f32 %v944_v0, %v827_v1 }
 0x1af   : > { %v1013_v48 = vadd.f32 %v1012_v26, %v945_v13 }
 0x1b1   : > { %v1069_v22 = vadd.f32 %v1068_v15, %v1013_v48 }
 0x1b4   : > { %v835_v62 = vpop.f32.mrf.mxu2  ;;  %v1192_v38 = vpop.f32.mrf.mxu3 }
 0x1b5   : > { %v949_v47 = vadd.f32 %v948_v39, %v835_v62 }
 0x1b7   : > { %v1018_v44 = vadd.f32 %v1017_v25, %v949_v47 }
 0x1b9   : > { %v1075_v51 = vadd.f32 %v1074_v60, %v1018_v44 }
 0x1bc   : > { %v1143_v52 = vpop.f32.mrf.mxu2  ;;  %v1196_v21 = vpop.f32.mrf.mxu3 }
 0x1bd   : > { %v1144_v29 = vadd.f32 %v1143_v52, %v1057_v57 }
 0x1bf   : > { %v1193_v18 = vadd.f32 %v1192_v38, %v1144_v29 }
 0x1c1   : > { %vm1207_vm3 = vcmp.lt.f32.partialorder %v1193_v18, 10.0 }
 0x1c2   : > { %v1211_v14 = vsel %vm1207_vm3, %v1442_v59, 0.0 }
 0x1c3   : > { %v1216_v31 = vsel %vm279_vm1, %v1211_v14, 0.0 }
 0x1c4   : > { %v1147_v30 = vpop.f32.mrf.mxu2  ;;  %v1200_v4 = vpop.f32.mrf.mxu3 }
 0x1c5   : > { %v1148_v61 = vadd.f32 %v1147_v30, %v1063_v36 }
 0x1c7   : > { %v1197_v9 = vadd.f32 %v1196_v21, %v1148_v61 }
 0x1c9   : > { %vm1208_vm2 = vcmp.lt.f32.partialorder %v1197_v9, 10.0 }
 0x1ca   : > { %v1212_v46 = vsel %vm1208_vm2, %v1875_v2, 0.0 }
 0x1cb   : > { %v1217_v11 = vsel %vm279_vm1, %v1212_v46, 0.0 }
 0x1cc   : > { %v1151_v16 = vpop.f32.mrf.mxu2  ;;  %v1204_v32 = vpop.f32.mrf.mxu3  ;;  %v1218_v42 = vadd.f32 %v1217_v11, %v1216_v31 }
 0x1cd   : > { %v1152_v23 = vadd.f32 %v1151_v16, %v1069_v22 }
 0x1cf   : > { %v1201_v24 = vadd.f32 %v1200_v4, %v1152_v23 }
 0x1d1   : > { %vm1209_vm4 = vcmp.lt.f32.partialorder %v1201_v24, 10.0 }
 0x1d2   : > { %v1213_v10 = vsel %vm1209_vm4, %v1931_v58, 0.0 }
 0x1d3   : > { %v1219_v37 = vsel %vm279_vm1, %v1213_v10, 0.0 }
 0x1d4   : > { %v1155_v27 = vpop.f32.mrf.mxu2  ;;  %v1220_v2 = vadd.f32 %v1219_v37, %v1218_v42 }
 0x1d5   : > { %v1156_v6 = vadd.f32 %v1155_v27, %v1075_v51 }
 0x1d7   : > { %v1205_v45 = vadd.f32 %v1204_v32, %v1156_v6 }
 0x1d9   : > { %vm1210_vm5 = vcmp.lt.f32.partialorder %v1205_v45, 10.0 }
 0x1da   : > { %v1214_v50 = vsel %vm1210_vm5, %v1972_v63, 0.0 }
 0x1db   : > { %v1221_v28 = vsel %vm279_vm1, %v1214_v50, 0.0 }
 0x1dc   : > { %v1222_v35 = vadd.f32 %v1221_v28, %v1220_v2 }
 0x1de   : > { %1223 = vadd.xlane.f32.xlu0 %v1222_v35 }
 0x251   : > { %v1224_v43 = vpop.xlane.xlu0 %1223 }
 0x252   : > { %v1225_v58 = vrot.slane %v1224_v43, 4 }
 0x254   : > { %v1226_v53 = vadd.f32 %v1225_v58, %v1224_v43 }
 0x256   : > { %v1227_v3 = vrot.slane %v1226_v53, 2 }
 0x258   : > { %v1228_v54 = vadd.f32 %v1227_v3, %v1226_v53 }
 0x25a   : > { %v1229_v7 = vrot.slane %v1228_v54, 1 }
 0x25c   : > { %v1230_v8 = vadd.f32 %v1229_v7, %v1228_v54 }
 0x25e   : > { %1346 = vpush %v1230_v8 }
 0x28f   : > { %s1347_s15 = spop %1346 }
 0x290   : > { %v1232_v40 = vstv %s1347_s15 }
 0x291   : > { %v1233_v41 = vadd.f32 %v1232_v40, %v1215_v33 }
 0x293   : > { %1234 = vst [vmem:[#allocation8] sm:$0xff] %v1233_v41 }
 0x294 PF: > { %s2361_s19 = sadd.s32 4294967295, %s1619_s17   ;;  %s1245_s4 = sshll.u32 %s2339_s3, 4  ;;  %s1246_s4 = int_to_ptr.hbm [resolvable:$true] %s1245_s4 }
 0x295   : > { %p1378_p1 = scmp.eq.s32.totalorder %s2361_s19, 3  ;;  %s1626_s10 = smov [#allocation8]  }
 0x296   : > { %s1243_s11 = sshll.u32 %s1626_s10, 4  ;;  %s1244_s11 = int_to_ptr.vmem [resolvable:$true] %s1243_s11 }
 0x297   : > { %1359 = dma.vmem_to_hbm [thread:$0]  (%p1378_p1), %s1244_s11, 128, %s1246_s4, [#allocation4]  }
 0x298   : > { %1594 = dma.done.wait (%p1378_p1), [#allocation4], 128  }
 0x299   : > { %1596 = vsyncadd (%p1378_p1), [#allocation4], 4294967168 }
 0x29a PF: > { %s18_s17 = sadd.s32 1, %s1619_s17   ;;  %s2362_s12 = smov %s1603_s13 }
 0x29b   : > { %p15_p4 = scmp.ge.s32.totalorder %s18_s17, 6   ;;  %s2363_s13 = smov %s1607_s14 }
 0x29c   : > { %s2364_s14 = smov %s1732_s5  ;;  %s2365_s15 = smov %s1615_s16 }
 0x29d   : > { %s2366_s16 = smov %s2368_s7  ;;  %17 = sbr.rel (!%p15_p4) target bundleno = 6 (0x6), region = 86 }
 0x2a2   :  { %1259 = vsyncpa [#allocation3], 1 }
 0x2a3   :  { %1261 = vsyncpa [#allocation3 + $0x1], 1 }
 0x2a4   :  { %1262 = vsyncpa [#allocation6], 1 }
 0x2a5   :  { %1263 = vsyncpa [#allocation4], 1 }
 0x2a6   :  { %1265 = vsyncpa [#allocation4 + $0x1], 1 }

</bundles_post_ra>
